<compile_context>
chip_gen: v5e
topology: v5e:2x2
jax: 0.10.0
libtpu: 0.0.40
codegen_flags: <defaults>
</compile_context>

<pallas_src>
import functools

import jax
import jax.numpy as jnp
from jax.experimental import pallas as pl
from jax.experimental.pallas import tpu as pltpu

LANES = 128
ACC_ROWS = 32                 # (32,128) f32 accumulator = 4 independent vregs
MAX_BLOCK_ROWS = 8192         # (8192,128) f32 = 4 MiB / input / pipeline buffer
VMEM_LIMIT_BYTES = 32 * 1024 * 1024   # 2 inputs x 2 bufs x 4 MiB + slack
DEFAULT_MIN_PALLAS_ELEMS = 1 << 18    # ~1 MiB f32 per input


def _round_up(x, m):
    return (x + m - 1) // m * m


def _huber_sum_jnp(x, y, delta):
    d = x.astype(jnp.float32) - y.astype(jnp.float32)
    ad = jnp.abs(d)
    t = jnp.minimum(ad, delta)
    return jnp.sum(t * (ad - 0.5 * t))


def _huber_kernel(x_ref, y_ref, o_ref, acc_ref, *,
                  delta, block_rows, acc_rows, last_valid_rows, mask_last):
    k = pl.program_id(0)
    nk = pl.num_programs(0)

    @pl.when(k == 0)
    def _():
        acc_ref[...] = jnp.zeros_like(acc_ref)

    x = x_ref[...].astype(jnp.float32)
    y = y_ref[...].astype(jnp.float32)
    d = x - y
    ad = jnp.abs(d)
    # Min-form Huber: identical to the where() branch form, fewer VPU ops.
    t = jnp.minimum(ad, delta)
    loss = t * (ad - 0.5 * t)

    groups = block_rows // acc_rows

    def accumulate(vals):
        acc_ref[...] += jnp.sum(vals.reshape(groups, acc_rows, LANES), axis=0)

    if mask_last:
        # Only the final (partial) block pays for the iota/compare/select;
        # keep it a select so garbage (NaN/Inf) rows never reach the sum.
        @pl.when(k == nk - 1)
        def _():
            row_ids = jax.lax.broadcasted_iota(jnp.int32, loss.shape, 0)
            accumulate(jnp.where(row_ids < last_valid_rows, loss, 0.0))

        @pl.when(k != nk - 1)
        def _():
            accumulate(loss)
    else:
        accumulate(loss)

    @pl.when(k == nk - 1)
    def _():
        # Single cross-lane reduce for the whole run.
        o_ref[0, 0] = jnp.sum(acc_ref[...])


def huber_loss(inputs, targets, delta=1.0, *,
               min_pallas_elems=DEFAULT_MIN_PALLAS_ELEMS):
    """Mean-reduced Huber loss, matching torch.nn.HuberLoss(reduction='mean')."""
    assert inputs.shape == targets.shape
    n = int(inputs.size)
    delta = float(delta)

    x = inputs.reshape(-1)
    y = targets.reshape(-1)

    # Tiny inputs: a fused XLA elementwise+reduce beats kernel-launch overhead.
    if n < max(min_pallas_elems, LANES):
        return _huber_sum_jnp(x, y, delta) / jnp.float32(n)

    # Lane-dense (rows, 128) slab. Only a sub-128 element tail (if any) is
    # handled outside the kernel — no full-array pad/concatenate copy.
    n_main = (n // LANES) * LANES
    rows = n_main // LANES

    tail_sum = jnp.float32(0.0)
    if n_main != n:
        tail_sum = _huber_sum_jnp(x[n_main:], y[n_main:], delta)
        x = x[:n_main]
        y = y[:n_main]

    x2 = x.reshape(rows, LANES)
    y2 = y.reshape(rows, LANES)

    # Pick block_rows <= rows, multiple of 8 (or the full dim), and a
    # compatible accumulator height that divides it.
    if rows % ACC_ROWS == 0:
        block_rows = min(MAX_BLOCK_ROWS, rows)
        acc_rows = ACC_ROWS
    elif rows > MAX_BLOCK_ROWS:
        block_rows = MAX_BLOCK_ROWS
        acc_rows = ACC_ROWS
    elif rows >= ACC_ROWS:
        block_rows = (rows // ACC_ROWS) * ACC_ROWS
        acc_rows = ACC_ROWS
    else:
        block_rows = rows          # single block == full (small) slab
        acc_rows = rows

    num_blocks = pl.cdiv(rows, block_rows)
    last_valid_rows = rows - (num_blocks - 1) * block_rows
    mask_last = last_valid_rows != block_rows   # static: compiled out if False

    kernel = functools.partial(
        _huber_kernel,
        delta=delta,
        block_rows=block_rows,
        acc_rows=acc_rows,
        last_valid_rows=last_valid_rows,
        mask_last=mask_last,
    )

    cost = pl.CostEstimate(
        flops=6 * n_main,
        transcendentals=0,
        bytes_accessed=n_main * (x2.dtype.itemsize + y2.dtype.itemsize) + 4,
    )

    main_sum = pl.pallas_call(
        kernel,
        out_shape=jax.ShapeDtypeStruct((1, 1), jnp.float32),
        grid_spec=pltpu.PrefetchScalarGridSpec(
            num_scalar_prefetch=0,
            grid=(num_blocks,),
            in_specs=[
                pl.BlockSpec((block_rows, LANES), lambda k: (k, 0)),
                pl.BlockSpec((block_rows, LANES), lambda k: (k, 0)),
            ],
            out_specs=pl.BlockSpec(
                (1, 1), lambda k: (0, 0), memory_space=pltpu.SMEM),
            scratch_shapes=[pltpu.VMEM((acc_rows, LANES), jnp.float32)],
        ),
        compiler_params=pltpu.CompilerParams(
            dimension_semantics=("arbitrary",),
            vmem_limit_bytes=VMEM_LIMIT_BYTES,
        ),
        cost_estimate=cost,
    )(x2, y2)[0, 0]

    return (main_sum + tail_sum) / jnp.float32(n)


def _reference_huber(inputs, targets, delta):
    d = inputs.astype(jnp.float32) - targets.astype(jnp.float32)
    ad = jnp.abs(d)
    loss = jnp.where(ad <= delta, 0.5 * d * d, delta * (ad - 0.5 * delta))
    return jnp.mean(loss)


if __name__ == "__main__":
    DELTA = 1.0   # cfg.delta — deterministic, in-script

    key = jax.random.PRNGKey(0)
    k1, k2 = jax.random.split(key)
    inputs = jax.random.normal(k1, (2, 4, 16, 16), dtype=jnp.float32)
    targets = jax.random.normal(k2, (2, 4, 16, 16), dtype=jnp.float32)

    # Force the Pallas path for this small demo (the wrapper would otherwise
    # short-circuit tiny inputs to pure XLA).
    loss = huber_loss(inputs, targets, delta=DELTA, min_pallas_elems=0)
    loss = jax.block_until_ready(loss)

    ref = _reference_huber(inputs, targets, DELTA)
    assert jnp.allclose(loss, ref, atol=1e-5, rtol=1e-5), (loss, ref)

    print("KERNEL_OK")
</pallas_src>

<mosaic_0001>
module attributes {stable_mosaic.version = 11 : i64} {
  func.func @_huber_kernel(%arg0: i32, %arg1: memref<16x128xf32, #tpu.memory_space<vmem>>, %arg2: memref<16x128xf32, #tpu.memory_space<vmem>>, %arg3: memref<1x1xf32, #tpu.memory_space<smem>>, %arg4: memref<16x128xf32, #tpu.memory_space<vmem>>) attributes {dimension_semantics = [#tpu.dimension_semantics<arbitrary>], iteration_bounds = array<i64: 1>, scalar_prefetch = 0 : i64, scratch_operands = 1 : i64, tpu.core_type = #tpu.core_type<tc>, window_params = [{transform_indices = @transform_0, window_bounds = array<i64: 16, 128>}, {transform_indices = @transform_1, window_bounds = array<i64: 16, 128>}, {transform_indices = @transform_2, window_bounds = array<i64: 1, 1>}]} {
    %c0_i32 = arith.constant 0 : i32
    %0 = arith.cmpi eq, %arg0, %c0_i32 : i32
    %1 = arith.extui %0 : i1 to i32
    %c0_i32_0 = arith.constant 0 : i32
    %2 = arith.cmpi ne, %1, %c0_i32_0 : i32
    scf.if %2 {
      %cst_12 = arith.constant 0.000000e+00 : f32
      %21 = vector.broadcast %cst_12 : f32 to vector<16x128xf32>
      %c0_13 = arith.constant 0 : index
      %c0_14 = arith.constant 0 : index
      %22 = vector.load %arg4[%c0_13, %c0_14] : memref<16x128xf32, #tpu.memory_space<vmem>>, vector<16x128xf32>
      tpu.vector_store %arg4[%c0_13, %c0_14], %21 {strides = array<i32>} : memref<16x128xf32, #tpu.memory_space<vmem>>, vector<16x128xf32>,
    } else {
    }
    %c0 = arith.constant 0 : index
    %c0_1 = arith.constant 0 : index
    %3 = vector.load %arg1[%c0, %c0_1] : memref<16x128xf32, #tpu.memory_space<vmem>>, vector<16x128xf32>
    %c0_2 = arith.constant 0 : index
    %c0_3 = arith.constant 0 : index
    %4 = vector.load %arg2[%c0_2, %c0_3] : memref<16x128xf32, #tpu.memory_space<vmem>>, vector<16x128xf32>
    %5 = arith.subf %3, %4 : vector<16x128xf32>
    %6 = math.absf %5 : vector<16x128xf32>
    %cst = arith.constant 1.000000e+00 : f32
    %7 = vector.broadcast %cst : f32 to vector<16x128xf32>
    %8 = arith.minimumf %6, %7 : vector<16x128xf32>
    %cst_4 = arith.constant 5.000000e-01 : f32
    %9 = vector.broadcast %cst_4 : f32 to vector<16x128xf32>
    %10 = arith.mulf %9, %8 : vector<16x128xf32>
    %11 = arith.subf %6, %10 : vector<16x128xf32>
    %12 = arith.mulf %8, %11 : vector<16x128xf32>
    %c0_5 = arith.constant 0 : index
    %c0_6 = arith.constant 0 : index
    %13 = vector.load %arg4[%c0_5, %c0_6] : memref<16x128xf32, #tpu.memory_space<vmem>>, vector<16x128xf32>
    %14 = vector.shape_cast %12 : vector<16x128xf32> to vector<1x16x128xf32>
    %cst_7 = arith.constant dense<0.000000e+00> : vector<16x128xf32>
    %15 = vector.multi_reduction <add>, %14, %cst_7 [0] : vector<1x16x128xf32> to vector<16x128xf32>
    %16 = arith.addf %13, %15 : vector<16x128xf32>
    %c0_8 = arith.constant 0 : index
    %c0_9 = arith.constant 0 : index
    %17 = vector.load %arg4[%c0_8, %c0_9] : memref<16x128xf32, #tpu.memory_space<vmem>>, vector<16x128xf32>
    tpu.vector_store %arg4[%c0_8, %c0_9], %16 {strides = array<i32>} : memref<16x128xf32, #tpu.memory_space<vmem>>, vector<16x128xf32>,
    %c0_i32_10 = arith.constant 0 : i32
    %18 = arith.cmpi eq, %arg0, %c0_i32_10 : i32
    %19 = arith.extui %18 : i1 to i32
    %c0_i32_11 = arith.constant 0 : i32
    %20 = arith.cmpi ne, %19, %c0_i32_11 : i32
    scf.if %20 {
      %c0_12 = arith.constant 0 : index
      %c0_13 = arith.constant 0 : index
      %21 = vector.load %arg4[%c0_12, %c0_13] : memref<16x128xf32, #tpu.memory_space<vmem>>, vector<16x128xf32>
      %22 = vector.shape_cast %21 : vector<16x128xf32> to vector<1x16x128xf32>
      %cst_14 = arith.constant dense<0.000000e+00> : vector<1xf32>
      %23 = vector.multi_reduction <add>, %22, %cst_14 [1, 2] : vector<1x16x128xf32> to vector<1xf32>
      %24 = vector.shape_cast %23 : vector<1xf32> to vector<1x1x1xf32>
      %25 = vector.extract %24[0, 0, 0] : f32 from vector<1x1x1xf32>
      %c0_15 = arith.constant 0 : index
      %c0_16 = arith.constant 0 : index
      %26 = memref.load %arg3[%c0_15, %c0_16] : memref<1x1xf32, #tpu.memory_space<smem>>
      memref.store %25, %arg3[%c0_15, %c0_16] : memref<1x1xf32, #tpu.memory_space<smem>>
    } else {
    }
    return
  }
  func.func @transform_0(%arg0: i32) -> (i32, i32) {
    %c0_i32 = arith.constant 0 : i32
    %c0_i32_0 = arith.constant 0 : i32
    return %arg0, %c0_i32 : i32, i32
  }
  func.func @transform_1(%arg0: i32) -> (i32, i32) {
    %c0_i32 = arith.constant 0 : i32
    %c0_i32_0 = arith.constant 0 : i32
    return %arg0, %c0_i32 : i32, i32
  }
  func.func @transform_2(%arg0: i32) -> (i32, i32) {
    %c0_i32 = arith.constant 0 : i32
    %c0_i32_0 = arith.constant 0 : i32
    %c0_i32_1 = arith.constant 0 : i32
    return %c0_i32, %c0_i32_0 : i32, i32
  }
}

</mosaic_0001>

<bundles_post_ra>
// kernel: tpu_custom_call.1
= control target key start
LH: loop header
LB: loop body
LE: loop exit
PB: predicated region body
PF: predicated region fallthrough
CT: control target
= control target key end

     0   :  { %7 = vsyncpa [#allocation4], 0  ;;  %s210_s0 = inlined_call_operand.hbm [shape: f32[16,128], index: 0, kind: input, shape index: {}]   ;;  %s211_s1 = inlined_call_operand.hbm [shape: f32[16,128], index: 1, kind: input, shape index: {}]   ;;  %s212_s2 = inlined_call_operand.hbm [shape: f32[1,1], index: 2, kind: output, shape index: {}]  }
   0x1   :  { %8 = vsyncpa [#allocation7], 0 }
   0x2   :  { %9 = vsyncpa [#allocation5], 0  ;;  %s14_s11 = sshll.u32 %s210_s0, 4  ;;  %s181_s12 = smov [#allocation3]   ;;  %s15_s11 = int_to_ptr.hbm [resolvable:$true] %s14_s11 }
   0x3   :  { %s16_s13 = sshll.u32 %s181_s12, 4  ;;  %s27_s16 = sshll.u32 %s211_s1, 4  ;;  %s17_s13 = int_to_ptr.vmem [resolvable:$true] %s16_s13  ;;  %s28_s16 = int_to_ptr.hbm [resolvable:$true] %s27_s16 }
   0x4   :  { %s182_s17 = smov 128   ;;  %s183_s18 = smov 8  }
   0x5   :  { %22 = dma.hbm_to_vmem [thread:$0]  %s15_s11, 256, %s17_s13, [#allocation4], %s182_s17, %s182_s17, %s183_s18  }
   0x6   :  { %s184_s19 = smov [#allocation6]  }
   0x7   :  { %s29_s20 = sshll.u32 %s184_s19, 4  ;;  %s30_s20 = int_to_ptr.vmem [resolvable:$true] %s29_s20 }
   0x8   :  { %35 = dma.hbm_to_vmem [thread:$0]  %s28_s16, 256, %s30_s20, [#allocation7], %s182_s17, %s182_s17, %s183_s18  }
   0x9   :  { %175 = dma.done.wait [#allocation4], 256  }
   0xa   :  { %176 = vsyncadd [#allocation4], 4294967040 }
   0xb   :  { %177 = dma.done.wait [#allocation7], 256  }
   0xc   :  { %178 = vsyncadd [#allocation7], 4294967040  ;;  %v50_v0 = vld [vmem:[#allocation3] sm:$0xff]  ;;  %v51_v1 = vld [vmem:[#allocation3 + $0x8] sm:$0xff]  ;;  %s96_s21 = sshll.u32 %s212_s2, 4  ;;  %s185_s23 = smov [#allocation8]   ;;  %s97_s21 = int_to_ptr.hbm [resolvable:$true] %s96_s21 }
   0xd   :  { %v52_v2 = vld [vmem:[#allocation6] sm:$0xff]  ;;  %v53_v3 = vld [vmem:[#allocation6 + $0x8] sm:$0xff] }
   0xe   :  { %v54_v4 = vsub.f32 %v50_v0, %v52_v2  ;;  %v55_v5 = vsub.f32 %v51_v1, %v53_v3 }
  0x10   :  { %v56_v6 = vand.u32 2147483647, %v54_v4  ;;  %v57_v7 = vand.u32 2147483647, %v55_v5 }
  0x12   :  { %v58_v8 = vmin.f32 %v56_v6, 1.0  ;;  %v59_v9 = vmin.f32 %v57_v7, 1.0 }
  0x14   :  { %v60_v10 = vmul.f32 0.5, %v58_v8  ;;  %v61_v11 = vmul.f32 0.5, %v59_v9 }
  0x16   :  { %v62_v12 = vsub.f32 %v56_v6, %v60_v10  ;;  %v63_v13 = vsub.f32 %v57_v7, %v61_v11 }
  0x18   :  { %v64_v14 = vmul.f32 %v62_v12, %v58_v8  ;;  %v65_v15 = vmul.f32 %v63_v13, %v59_v9 }
  0x1a   :  { %v79_v16 = vadd.f32 %v65_v15, %v64_v14 }
  0x1c   :  { %80 = vadd.xlane.f32.xlu0 %v79_v16 }
  0x8f   :  { %v81_v17 = vpop.xlane.xlu0 %80 }
  0x90   :  { %v82_v18 = vrot.slane %v81_v17, 4 }
  0x92   :  { %v83_v19 = vadd.f32 %v82_v18, %v81_v17 }
  0x94   :  { %v84_v20 = vrot.slane %v83_v19, 2 }
  0x96   :  { %v85_v21 = vadd.f32 %v84_v20, %v83_v19 }
  0x98   :  { %v86_v22 = vrot.slane %v85_v21, 1 }
  0x9a   :  { %v87_v23 = vadd.f32 %v86_v22, %v85_v21 }
  0x9c   :  { %108 = vpush %v87_v23 }
  0xcd   :  { %s109_s22 = spop %108 }
  0xce   :  { %90 = sst [smem:[#allocation8]] %s109_s22 }
  0xcf   :  { %99 = dma.smem_to_hbm %s185_s23, 16, %s97_s21, [#allocation5]  }
  0xd0   :  { %179 = dma.done.wait [#allocation5], 16  }
  0xd1   :  { %180 = vsyncadd [#allocation5], 4294967280 }
  0xd2   :  { %104 = sfence }
  0xd3   :  { %105 = vsyncpa [#allocation4], 1 }
  0xd4   :  { %106 = vsyncpa [#allocation7], 1 }
  0xd5   :  { %107 = vsyncpa [#allocation5], 1 }

</bundles_post_ra>
